<compile_context>
chip_gen: v6e
topology: v6e:2x2x1
jax: 0.10.0
libtpu: 0.0.40
codegen_flags: <defaults>
</compile_context>

<pallas_src>
import functools

import jax
import jax.numpy as jnp
from jax.experimental import pallas as pl
from jax.experimental.pallas import tpu as pltpu


# ----------------------------------------------------------------------------
# helpers
# ----------------------------------------------------------------------------
_TM_TARGET = 512                 # max rows per tile
_MIN_TM = 16                     # bf16 sublane packing granularity
_VMEM_CAP = 48 * 1024 * 1024     # stays inside v7x 64 MiB physical VMEM
_VMEM_FLOOR = 16 * 1024 * 1024   # never below the smallest default scoped limit


def _cdiv(a, b):
    return (a + b - 1) // b


def _round_up(x, m):
    return ((x + m - 1) // m) * m


def _pick_tm(m):
    """Rows per tile: aim for >= 2 (target 4) grid steps (megacore + pipelining) while
    keeping tiles a multiple of 16 rows and minimizing dead-row padding."""
    max_tiles = max(1, _cdiv(m, _MIN_TM))
    n_tiles = min(max_tiles, max(4, _cdiv(m, _TM_TARGET)))
    tm = _round_up(_cdiv(m, n_tiles), _MIN_TM)
    return min(tm, _TM_TARGET)


def _pad_rows(a, mp):
    return a if a.shape[0] == mp else jnp.pad(a, ((0, mp - a.shape[0]), (0, 0)))


def _npad_for(cout):
    return _round_up(max(cout, 128), 128)


def _compiler_params(per_step_bytes):
    # ~2 buffers per pipelined operand + headroom for Mosaic internal scratch.
    limit = int(min(_VMEM_CAP, max(_VMEM_FLOOR, 4 * per_step_bytes)))
    return pltpu.CompilerParams(
        dimension_semantics=("parallel",),
        vmem_limit_bytes=limit,
    )


# ----------------------------------------------------------------------------
# Pallas kernels
# ----------------------------------------------------------------------------
def _matmul_act_kernel(a_ref, w_ref, o_ref, *, act):
    """o = act(a @ w).  a: [TM, K] bf16, w: [K, Npad] bf16, o: [TM, Npad]."""
    out = jnp.dot(a_ref[...], w_ref[...], preferred_element_type=jnp.float32)
    if act == "leaky":
        out = jnp.maximum(out, 0.2 * out)
    elif act == "sigmoid":
        t = jnp.exp(-out)                           # EUP
        out = pl.reciprocal(1.0 + t, approx=True)   # EUP, |rel err| <= 2^-14
    o_ref[...] = out.astype(o_ref.dtype)


def _matmul_stats_kernel(a_ref, w_ref, s_ref):
    """Per-tile partial sum / sum-of-squares of the conv matmul (no raw writeback).

    a: [TM, K] bf16, w: [K, Npad] bf16, s: [8, Npad] f32
    (row 0 = sum over TM, row 1 = sum of squares; rows 2..7 are layout padding, unread).
    """
    out = jnp.dot(a_ref[...], w_ref[...], preferred_element_type=jnp.float32)
    s_ref[0:1, :] = jnp.sum(out, axis=0, keepdims=True)
    s_ref[1:2, :] = jnp.sum(out * out, axis=0, keepdims=True)


def _matmul_bn_leaky_kernel(a_ref, w_ref, scale_ref, shift_ref, o_ref):
    """o = leaky((a @ w) * scale + shift), bf16 writeback.

    a: [TM, K] bf16, w: [K, Npad] bf16, scale/shift: [1, Npad] f32, o: [TM, Npad] bf16.
    """
    out = jnp.dot(a_ref[...], w_ref[...], preferred_element_type=jnp.float32)
    y = out * scale_ref[...] + shift_ref[...]
    o_ref[...] = jnp.maximum(y, 0.2 * y).astype(o_ref.dtype)


# ----------------------------------------------------------------------------
# pallas_call wrappers (tiled over M, "parallel")
# ----------------------------------------------------------------------------
def _matmul_act_call(a_bf16, w_bf16, tm, act, out_dtype):
    mp, k = a_bf16.shape
    npad = w_bf16.shape[1]
    per_step = tm * k * 2 + k * npad * 2 + tm * npad * jnp.dtype(out_dtype).itemsize
    return pl.pallas_call(
        functools.partial(_matmul_act_kernel, act=act),
        out_shape=jax.ShapeDtypeStruct((mp, npad), out_dtype),
        grid=(mp // tm,),
        in_specs=[pl.BlockSpec((tm, k), lambda i: (i, 0)),
                  pl.BlockSpec((k, npad), lambda i: (0, 0))],
        out_specs=pl.BlockSpec((tm, npad), lambda i: (i, 0)),
        compiler_params=_compiler_params(per_step),
    )(a_bf16, w_bf16)


def _matmul_stats_call(a_bf16, w_bf16, tm):
    mp, k = a_bf16.shape
    npad = w_bf16.shape[1]
    ntiles = mp // tm
    per_step = tm * k * 2 + k * npad * 2 + 8 * npad * 4
    return pl.pallas_call(
        _matmul_stats_kernel,
        out_shape=jax.ShapeDtypeStruct((8 * ntiles, npad), jnp.float32),
        grid=(ntiles,),
        in_specs=[pl.BlockSpec((tm, k), lambda i: (i, 0)),
                  pl.BlockSpec((k, npad), lambda i: (0, 0))],
        out_specs=pl.BlockSpec((8, npad), lambda i: (i, 0)),
        compiler_params=_compiler_params(per_step),
    )(a_bf16, w_bf16)


def _matmul_bn_leaky_call(a_bf16, w_bf16, scale_2d, shift_2d, tm):
    mp, k = a_bf16.shape
    npad = w_bf16.shape[1]
    per_step = tm * k * 2 + k * npad * 2 + tm * npad * 2 + 2 * npad * 4
    return pl.pallas_call(
        _matmul_bn_leaky_kernel,
        out_shape=jax.ShapeDtypeStruct((mp, npad), jnp.bfloat16),
        grid=(mp // tm,),
        in_specs=[pl.BlockSpec((tm, k), lambda i: (i, 0)),
                  pl.BlockSpec((k, npad), lambda i: (0, 0)),
                  pl.BlockSpec((1, npad), lambda i: (0, 0)),
                  pl.BlockSpec((1, npad), lambda i: (0, 0))],
        out_specs=pl.BlockSpec((tm, npad), lambda i: (i, 0)),
        compiler_params=_compiler_params(per_step),
    )(a_bf16, w_bf16, scale_2d, shift_2d)


# ----------------------------------------------------------------------------
# JAX glue: NHWC im2col (bf16, no extra cast) + weight packing
# ----------------------------------------------------------------------------
def _im2col_nhwc(x, ksize, stride, pad):
    """x: [B, H, W, C] -> rows [B*Ho*Wo, kh*kw*C] (column order = kh, kw, c)."""
    if pad > 0:
        x = jnp.pad(x, ((0, 0), (pad, pad), (pad, pad), (0, 0)))
    B, H, W, C = x.shape
    Ho = (H - ksize) // stride + 1
    Wo = (W - ksize) // stride + 1
    patches = []
    for kh in range(ksize):
        for kw in range(ksize):
            patches.append(x[:, kh:kh + stride * (Ho - 1) + 1:stride,
                             kw:kw + stride * (Wo - 1) + 1:stride, :])
    col = jnp.stack(patches, axis=3)                 # [B, Ho, Wo, K*K, C]
    col = col.reshape(B * Ho * Wo, ksize * ksize * C)
    return col, B, Ho, Wo


def _prep_weight(w_oihw, npad):
    """OIHW -> [kh*kw*Cin, Npad] bf16 (Cout zero-padded to lane-dense width)."""
    cout, cin, kh, kw = w_oihw.shape
    w_mat = jnp.transpose(w_oihw, (2, 3, 1, 0)).reshape(kh * kw * cin, cout)
    if npad > cout:
        w_mat = jnp.pad(w_mat, ((0, 0), (0, npad - cout)))
    return w_mat.astype(jnp.bfloat16)


# ----------------------------------------------------------------------------
# layer builders (NHWC bf16 in -> NHWC out)
# ----------------------------------------------------------------------------
def conv_act(x_nhwc, w_oihw, stride, pad, act, out_dtype):
    cout, _, ksize, _ = w_oihw.shape
    npad = _npad_for(cout)
    col, B, Ho, Wo = _im2col_nhwc(x_nhwc, ksize, stride, pad)
    M = col.shape[0]
    tm = _pick_tm(M)
    mp = _round_up(M, tm)
    col = _pad_rows(col, mp)
    w_mat = _prep_weight(w_oihw, npad)
    out = _matmul_act_call(col, w_mat, tm, act, out_dtype)     # [Mp, Npad]
    return out[:M, :cout].reshape(B, Ho, Wo, cout)


def conv_bn_leaky(x_nhwc, w_oihw, gamma, beta, stride, pad, eps=1e-5):
    cout, _, ksize, _ = w_oihw.shape
    npad = _npad_for(cout)
    col, B, Ho, Wo = _im2col_nhwc(x_nhwc, ksize, stride, pad)
    M = col.shape[0]
    tm = _pick_tm(M)
    mp = _round_up(M, tm)
    col = _pad_rows(col, mp)
    w_mat = _prep_weight(w_oihw, npad)

    # Pass 1: per-tile partial sums only (no raw f32 activation writeback).
    stats = _matmul_stats_call(col, w_mat, tm).reshape(mp // tm, 8, npad)
    ssum = jnp.sum(stats[:, 0, :], axis=0)                     # (Npad,)
    ssq = jnp.sum(stats[:, 1, :], axis=0)
    # Padded rows of `col` are all-zero and the conv has no bias -> they contribute
    # nothing to either sum, so dividing by the true M is exact.
    mean = ssum / M
    # NOTE: one-pass E[x^2]-E[x]^2 in f32 (clamped at 0).  A two-pass centered variance
    # would need a third matmul sweep; post-conv activations here are near zero-mean so
    # cancellation stays well inside tolerance.  Stats come from the f32 MXU result, not
    # from the bf16-rounded activation.
    var = jnp.maximum(ssq / M - mean * mean, 0.0)
    g = jnp.pad(gamma.astype(jnp.float32), (0, npad - cout))
    b = jnp.pad(beta.astype(jnp.float32), (0, npad - cout))
    scale = g * jax.lax.rsqrt(var + eps)
    shift = b - mean * scale

    # Pass 2: recompute the matmul, fuse scale*x + shift + leaky, bf16 writeback.
    y = _matmul_bn_leaky_call(col, w_mat, scale.reshape(1, npad),
                              shift.reshape(1, npad), tm)
    return y[:M, :cout].reshape(B, Ho, Wo, cout)


# ----------------------------------------------------------------------------
# Discriminator forward (DCGAN, NCHW 32x32 input -> [B] probabilities)
# ----------------------------------------------------------------------------
def discriminator_forward(x_nchw, params, eps=1e-5):
    x = jnp.transpose(x_nchw, (0, 2, 3, 1)).astype(jnp.bfloat16)   # NHWC bf16, end to end
    x = conv_act(x, params["w1"], stride=2, pad=1, act="leaky", out_dtype=jnp.bfloat16)
    x = conv_bn_leaky(x, params["w2"], params["g2"], params["b2"], 2, 1, eps)
    x = conv_bn_leaky(x, params["w3"], params["g3"], params["b3"], 2, 1, eps)
    x = conv_act(x, params["w4"], stride=1, pad=0, act="sigmoid", out_dtype=jnp.float32)
    return x.reshape(-1).astype(jnp.float32)                       # == output.view(-1)


# ----------------------------------------------------------------------------
# Pure-JAX reference (same bf16-input / f32-accumulate rounding) for correctness
# ----------------------------------------------------------------------------
def _ref_conv(x, w, stride, pad):
    return jax.lax.conv_general_dilated(
        x.astype(jnp.bfloat16), w.astype(jnp.bfloat16),
        window_strides=(stride, stride), padding=[(pad, pad), (pad, pad)],
        dimension_numbers=("NCHW", "OIHW", "NCHW"),
        preferred_element_type=jnp.float32)


def _ref_bn_leaky(x, g, b, eps=1e-5):
    mean = x.mean(axis=(0, 2, 3), keepdims=True)
    var = ((x - mean) ** 2).mean(axis=(0, 2, 3), keepdims=True)
    y = (x - mean) * jax.lax.rsqrt(var + eps) * g.reshape(1, -1, 1, 1) \
        + b.reshape(1, -1, 1, 1)
    return jnp.where(y > 0, y, 0.2 * y)


def reference_forward(x, p, eps=1e-5):
    y = _ref_conv(x, p["w1"], 2, 1)
    y = jnp.where(y > 0, y, 0.2 * y)
    y = _ref_bn_leaky(_ref_conv(y, p["w2"], 2, 1), p["g2"], p["b2"], eps)
    y = _ref_bn_leaky(_ref_conv(y, p["w3"], 2, 1), p["g3"], p["b3"], eps)
    y = _ref_conv(y, p["w4"], 1, 0)
    return (1.0 / (1.0 + jnp.exp(-y))).reshape(-1)


# ----------------------------------------------------------------------------
def init_params(key, nc=3, ndf=8):
    ks = jax.random.split(key, 8)
    std = 0.02  # DCGAN weight init
    return {
        "w1": std * jax.random.normal(ks[0], (ndf, nc, 4, 4), jnp.float32),
        "w2": std * jax.random.normal(ks[1], (ndf * 2, ndf, 4, 4), jnp.float32),
        "g2": 1.0 + 0.1 * jax.random.normal(ks[4], (ndf * 2,), jnp.float32),
        "b2": 0.1 * jax.random.normal(ks[5], (ndf * 2,), jnp.float32),
        "w3": std * jax.random.normal(ks[2], (ndf * 4, ndf * 2, 4, 4), jnp.float32),
        "g3": 1.0 + 0.1 * jax.random.normal(ks[6], (ndf * 4,), jnp.float32),
        "b3": 0.1 * jax.random.normal(ks[7], (ndf * 4,), jnp.float32),
        "w4": std * jax.random.normal(ks[3], (1, ndf * 4, 4, 4), jnp.float32),
    }


if __name__ == "__main__":
    key = jax.random.PRNGKey(0)
    k_x, k_p = jax.random.split(key)
    B, nc, ndf, H = 2, 3, 8, 32  # 32x32 input -> final 4x4 valid conv yields 1x1
    x = jax.random.normal(k_x, (B, nc, H, H), jnp.float32)
    params = init_params(k_p, nc=nc, ndf=ndf)

    fwd = jax.jit(discriminator_forward)
    out = jax.block_until_ready(fwd(x, params))
    assert out.shape == (B,), out.shape

    ref = jax.block_until_ready(reference_forward(x, params))
    assert jnp.allclose(out, ref, atol=2e-3, rtol=2e-3), (out, ref)

    print("KERNEL_OK")
</pallas_src>

<mosaic_0001>
module attributes {stable_mosaic.version = 11 : i64} {
  func.func @_matmul_act_kernel(%arg0: i32, %arg1: memref<128x48xbf16, #tpu.memory_space<vmem>>, %arg2: memref<48x128xbf16, #tpu.memory_space<vmem>>, %arg3: memref<128x128xbf16, #tpu.memory_space<vmem>>) attributes {dimension_semantics = [#tpu.dimension_semantics<parallel>], iteration_bounds = array<i64: 4>, scalar_prefetch = 0 : i64, scratch_operands = 0 : i64, tpu.core_type = #tpu.core_type<tc>, window_params = [{transform_indices = @transform_0, window_bounds = array<i64: 128, 48>}, {pipeline_mode = #tpu.pipeline_mode<synchronous>, transform_indices = @transform_1, window_bounds = array<i64: 48, 128>}, {transform_indices = @transform_2, window_bounds = array<i64: 128, 128>}]} {
    %c0 = arith.constant 0 : index
    %c0_0 = arith.constant 0 : index
    %0 = vector.load %arg1[%c0, %c0_0] : memref<128x48xbf16, #tpu.memory_space<vmem>>, vector<128x48xbf16>
    %c0_1 = arith.constant 0 : index
    %c0_2 = arith.constant 0 : index
    %1 = vector.load %arg2[%c0_1, %c0_2] : memref<48x128xbf16, #tpu.memory_space<vmem>>, vector<48x128xbf16>
    %cst = arith.constant dense<0.000000e+00> : vector<128x128xf32>
    %2 = tpu.matmul %0, %1, %cst {dimension_numbers = #tpu.dot_dimension_numbers<[1], [0], [0], [1], [0, 0, 1, 1], [], []>} : vector<128x48xbf16>, vector<48x128xbf16>, vector<128x128xf32> -> vector<128x128xf32>
    %cst_3 = arith.constant 2.000000e-01 : f32
    %3 = vector.broadcast %cst_3 : f32 to vector<128x128xf32>
    %4 = arith.mulf %3, %2 : vector<128x128xf32>
    %5 = arith.maximumf %2, %4 : vector<128x128xf32>
    %6 = arith.truncf %5 : vector<128x128xf32> to vector<128x128xbf16>
    %c0_4 = arith.constant 0 : index
    %c0_5 = arith.constant 0 : index
    %7 = vector.load %arg3[%c0_4, %c0_5] : memref<128x128xbf16, #tpu.memory_space<vmem>>, vector<128x128xbf16>
    tpu.vector_store %arg3[%c0_4, %c0_5], %6 {strides = array<i32>} : memref<128x128xbf16, #tpu.memory_space<vmem>>, vector<128x128xbf16>,
    return
  }
  func.func @transform_0(%arg0: i32) -> (i32, i32) {
    %c0_i32 = arith.constant 0 : i32
    %c0_i32_0 = arith.constant 0 : i32
    return %arg0, %c0_i32 : i32, i32
  }
  func.func @transform_1(%arg0: i32) -> (i32, i32) {
    %c0_i32 = arith.constant 0 : i32
    %c0_i32_0 = arith.constant 0 : i32
    %c0_i32_1 = arith.constant 0 : i32
    return %c0_i32, %c0_i32_0 : i32, i32
  }
  func.func @transform_2(%arg0: i32) -> (i32, i32) {
    %c0_i32 = arith.constant 0 : i32
    %c0_i32_0 = arith.constant 0 : i32
    return %arg0, %c0_i32 : i32, i32
  }
}

module attributes {stable_mosaic.version = 11 : i64} {
  func.func @_matmul_stats_kernel(%arg0: i32, %arg1: memref<32x128xbf16, #tpu.memory_space<vmem>>, %arg2: memref<128x128xbf16, #tpu.memory_space<vmem>>, %arg3: memref<8x128xf32, #tpu.memory_space<vmem>>) attributes {dimension_semantics = [#tpu.dimension_semantics<parallel>], iteration_bounds = array<i64: 4>, scalar_prefetch = 0 : i64, scratch_operands = 0 : i64, tpu.core_type = #tpu.core_type<tc>, window_params = [{transform_indices = @transform_0, window_bounds = array<i64: 32, 128>}, {pipeline_mode = #tpu.pipeline_mode<synchronous>, transform_indices = @transform_1, window_bounds = array<i64: 128, 128>}, {transform_indices = @transform_2, window_bounds = array<i64: 8, 128>}]} {
    %c0 = arith.constant 0 : index
    %c0_0 = arith.constant 0 : index
    %0 = vector.load %arg1[%c0, %c0_0] : memref<32x128xbf16, #tpu.memory_space<vmem>>, vector<32x128xbf16>
    %c0_1 = arith.constant 0 : index
    %c0_2 = arith.constant 0 : index
    %1 = vector.load %arg2[%c0_1, %c0_2] : memref<128x128xbf16, #tpu.memory_space<vmem>>, vector<128x128xbf16>
    %cst = arith.constant dense<0.000000e+00> : vector<32x128xf32>
    %2 = tpu.matmul %0, %1, %cst {dimension_numbers = #tpu.dot_dimension_numbers<[1], [0], [0], [1], [0, 0, 1, 1], [], []>} : vector<32x128xbf16>, vector<128x128xbf16>, vector<32x128xf32> -> vector<32x128xf32>
    %cst_3 = arith.constant dense<0.000000e+00> : vector<128xf32>
    %3 = vector.multi_reduction <add>, %2, %cst_3 [0] : vector<32x128xf32> to vector<128xf32>
    %4 = vector.shape_cast %3 : vector<128xf32> to vector<1x128xf32>
    %c0_4 = arith.constant 0 : index
    %c0_5 = arith.constant 0 : index
    %5 = vector.load %arg3[%c0_4, %c0_5] : memref<8x128xf32, #tpu.memory_space<vmem>>, vector<1x128xf32>
    tpu.vector_store %arg3[%c0_4, %c0_5], %4 {strides = array<i32>} : memref<8x128xf32, #tpu.memory_space<vmem>>, vector<1x128xf32>,
    %6 = arith.mulf %2, %2 : vector<32x128xf32>
    %cst_6 = arith.constant dense<0.000000e+00> : vector<128xf32>
    %7 = vector.multi_reduction <add>, %6, %cst_6 [0] : vector<32x128xf32> to vector<128xf32>
    %8 = vector.shape_cast %7 : vector<128xf32> to vector<1x128xf32>
    %c1 = arith.constant 1 : index
    %c0_7 = arith.constant 0 : index
    %9 = vector.load %arg3[%c1, %c0_7] : memref<8x128xf32, #tpu.memory_space<vmem>>, vector<1x128xf32>
    tpu.vector_store %arg3[%c1, %c0_7], %8 {strides = array<i32>} : memref<8x128xf32, #tpu.memory_space<vmem>>, vector<1x128xf32>,
    return
  }
  func.func @transform_0(%arg0: i32) -> (i32, i32) {
    %c0_i32 = arith.constant 0 : i32
    %c0_i32_0 = arith.constant 0 : i32
    return %arg0, %c0_i32 : i32, i32
  }
  func.func @transform_1(%arg0: i32) -> (i32, i32) {
    %c0_i32 = arith.constant 0 : i32
    %c0_i32_0 = arith.constant 0 : i32
    %c0_i32_1 = arith.constant 0 : i32
    return %c0_i32, %c0_i32_0 : i32, i32
  }
  func.func @transform_2(%arg0: i32) -> (i32, i32) {
    %c0_i32 = arith.constant 0 : i32
    %c0_i32_0 = arith.constant 0 : i32
    return %arg0, %c0_i32 : i32, i32
  }
}

module attributes {stable_mosaic.version = 11 : i64} {
  func.func @_matmul_bn_leaky_kernel(%arg0: i32, %arg1: memref<32x128xbf16, #tpu.memory_space<vmem>>, %arg2: memref<128x128xbf16, #tpu.memory_space<vmem>>, %arg3: memref<1x128xf32, #tpu.memory_space<vmem>>, %arg4: memref<1x128xf32, #tpu.memory_space<vmem>>, %arg5: memref<32x128xbf16, #tpu.memory_space<vmem>>) attributes {dimension_semantics = [#tpu.dimension_semantics<parallel>], iteration_bounds = array<i64: 4>, scalar_prefetch = 0 : i64, scratch_operands = 0 : i64, tpu.core_type = #tpu.core_type<tc>, window_params = [{transform_indices = @transform_0, window_bounds = array<i64: 32, 128>}, {pipeline_mode = #tpu.pipeline_mode<synchronous>, transform_indices = @transform_1, window_bounds = array<i64: 128, 128>}, {pipeline_mode = #tpu.pipeline_mode<synchronous>, transform_indices = @transform_2, window_bounds = array<i64: 1, 128>}, {pipeline_mode = #tpu.pipeline_mode<synchronous>, transform_indices = @transform_3, window_bounds = array<i64: 1, 128>}, {transform_indices = @transform_4, window_bounds = array<i64: 32, 128>}]} {
    %c0 = arith.constant 0 : index
    %c0_0 = arith.constant 0 : index
    %0 = vector.load %arg1[%c0, %c0_0] : memref<32x128xbf16, #tpu.memory_space<vmem>>, vector<32x128xbf16>
    %c0_1 = arith.constant 0 : index
    %c0_2 = arith.constant 0 : index
    %1 = vector.load %arg2[%c0_1, %c0_2] : memref<128x128xbf16, #tpu.memory_space<vmem>>, vector<128x128xbf16>
    %cst = arith.constant dense<0.000000e+00> : vector<32x128xf32>
    %2 = tpu.matmul %0, %1, %cst {dimension_numbers = #tpu.dot_dimension_numbers<[1], [0], [0], [1], [0, 0, 1, 1], [], []>} : vector<32x128xbf16>, vector<128x128xbf16>, vector<32x128xf32> -> vector<32x128xf32>
    %c0_3 = arith.constant 0 : index
    %c0_4 = arith.constant 0 : index
    %3 = vector.load %arg3[%c0_3, %c0_4] : memref<1x128xf32, #tpu.memory_space<vmem>>, vector<1x128xf32>
    %4 = vector.broadcast %3 : vector<1x128xf32> to vector<32x128xf32>
    %5 = arith.mulf %2, %4 : vector<32x128xf32>
    %c0_5 = arith.constant 0 : index
    %c0_6 = arith.constant 0 : index
    %6 = vector.load %arg4[%c0_5, %c0_6] : memref<1x128xf32, #tpu.memory_space<vmem>>, vector<1x128xf32>
    %7 = vector.broadcast %6 : vector<1x128xf32> to vector<32x128xf32>
    %8 = arith.addf %5, %7 : vector<32x128xf32>
    %cst_7 = arith.constant 2.000000e-01 : f32
    %9 = vector.broadcast %cst_7 : f32 to vector<32x128xf32>
    %10 = arith.mulf %9, %8 : vector<32x128xf32>
    %11 = arith.maximumf %8, %10 : vector<32x128xf32>
    %12 = arith.truncf %11 : vector<32x128xf32> to vector<32x128xbf16>
    %c0_8 = arith.constant 0 : index
    %c0_9 = arith.constant 0 : index
    %13 = vector.load %arg5[%c0_8, %c0_9] : memref<32x128xbf16, #tpu.memory_space<vmem>>, vector<32x128xbf16>
    tpu.vector_store %arg5[%c0_8, %c0_9], %12 {strides = array<i32>} : memref<32x128xbf16, #tpu.memory_space<vmem>>, vector<32x128xbf16>,
    return
  }
  func.func @transform_0(%arg0: i32) -> (i32, i32) {
    %c0_i32 = arith.constant 0 : i32
    %c0_i32_0 = arith.constant 0 : i32
    return %arg0, %c0_i32 : i32, i32
  }
  func.func @transform_1(%arg0: i32) -> (i32, i32) {
    %c0_i32 = arith.constant 0 : i32
    %c0_i32_0 = arith.constant 0 : i32
    %c0_i32_1 = arith.constant 0 : i32
    return %c0_i32, %c0_i32_0 : i32, i32
  }
  func.func @transform_2(%arg0: i32) -> (i32, i32) {
    %c0_i32 = arith.constant 0 : i32
    %c0_i32_0 = arith.constant 0 : i32
    %c0_i32_1 = arith.constant 0 : i32
    return %c0_i32, %c0_i32_0 : i32, i32
  }
  func.func @transform_3(%arg0: i32) -> (i32, i32) {
    %c0_i32 = arith.constant 0 : i32
    %c0_i32_0 = arith.constant 0 : i32
    %c0_i32_1 = arith.constant 0 : i32
    return %c0_i32, %c0_i32_0 : i32, i32
  }
  func.func @transform_4(%arg0: i32) -> (i32, i32) {
    %c0_i32 = arith.constant 0 : i32
    %c0_i32_0 = arith.constant 0 : i32
    return %arg0, %c0_i32 : i32, i32
  }
}

module attributes {stable_mosaic.version = 11 : i64} {
  func.func @_matmul_stats_kernel(%arg0: i32, %arg1: memref<16x256xbf16, #tpu.memory_space<vmem>>, %arg2: memref<256x128xbf16, #tpu.memory_space<vmem>>, %arg3: memref<8x128xf32, #tpu.memory_space<vmem>>) attributes {dimension_semantics = [#tpu.dimension_semantics<parallel>], iteration_bounds = array<i64: 2>, scalar_prefetch = 0 : i64, scratch_operands = 0 : i64, tpu.core_type = #tpu.core_type<tc>, window_params = [{transform_indices = @transform_0, window_bounds = array<i64: 16, 256>}, {pipeline_mode = #tpu.pipeline_mode<synchronous>, transform_indices = @transform_1, window_bounds = array<i64: 256, 128>}, {transform_indices = @transform_2, window_bounds = array<i64: 8, 128>}]} {
    %c0 = arith.constant 0 : index
    %c0_0 = arith.constant 0 : index
    %0 = vector.load %arg1[%c0, %c0_0] : memref<16x256xbf16, #tpu.memory_space<vmem>>, vector<16x256xbf16>
    %c0_1 = arith.constant 0 : index
    %c0_2 = arith.constant 0 : index
    %1 = vector.load %arg2[%c0_1, %c0_2] : memref<256x128xbf16, #tpu.memory_space<vmem>>, vector<256x128xbf16>
    %cst = arith.constant dense<0.000000e+00> : vector<16x128xf32>
    %2 = tpu.matmul %0, %1, %cst {dimension_numbers = #tpu.dot_dimension_numbers<[1], [0], [0], [1], [0, 0, 1, 1], [], []>} : vector<16x256xbf16>, vector<256x128xbf16>, vector<16x128xf32> -> vector<16x128xf32>
    %cst_3 = arith.constant dense<0.000000e+00> : vector<128xf32>
    %3 = vector.multi_reduction <add>, %2, %cst_3 [0] : vector<16x128xf32> to vector<128xf32>
    %4 = vector.shape_cast %3 : vector<128xf32> to vector<1x128xf32>
    %c0_4 = arith.constant 0 : index
    %c0_5 = arith.constant 0 : index
    %5 = vector.load %arg3[%c0_4, %c0_5] : memref<8x128xf32, #tpu.memory_space<vmem>>, vector<1x128xf32>
    tpu.vector_store %arg3[%c0_4, %c0_5], %4 {strides = array<i32>} : memref<8x128xf32, #tpu.memory_space<vmem>>, vector<1x128xf32>,
    %6 = arith.mulf %2, %2 : vector<16x128xf32>
    %cst_6 = arith.constant dense<0.000000e+00> : vector<128xf32>
    %7 = vector.multi_reduction <add>, %6, %cst_6 [0] : vector<16x128xf32> to vector<128xf32>
    %8 = vector.shape_cast %7 : vector<128xf32> to vector<1x128xf32>
    %c1 = arith.constant 1 : index
    %c0_7 = arith.constant 0 : index
    %9 = vector.load %arg3[%c1, %c0_7] : memref<8x128xf32, #tpu.memory_space<vmem>>, vector<1x128xf32>
    tpu.vector_store %arg3[%c1, %c0_7], %8 {strides = array<i32>} : memref<8x128xf32, #tpu.memory_space<vmem>>, vector<1x128xf32>,
    return
  }
  func.func @transform_0(%arg0: i32) -> (i32, i32) {
    %c0_i32 = arith.constant 0 : i32
    %c0_i32_0 = arith.constant 0 : i32
    return %arg0, %c0_i32 : i32, i32
  }
  func.func @transform_1(%arg0: i32) -> (i32, i32) {
    %c0_i32 = arith.constant 0 : i32
    %c0_i32_0 = arith.constant 0 : i32
    %c0_i32_1 = arith.constant 0 : i32
    return %c0_i32, %c0_i32_0 : i32, i32
  }
  func.func @transform_2(%arg0: i32) -> (i32, i32) {
    %c0_i32 = arith.constant 0 : i32
    %c0_i32_0 = arith.constant 0 : i32
    return %arg0, %c0_i32 : i32, i32
  }
}

module attributes {stable_mosaic.version = 11 : i64} {
  func.func @_matmul_bn_leaky_kernel(%arg0: i32, %arg1: memref<16x256xbf16, #tpu.memory_space<vmem>>, %arg2: memref<256x128xbf16, #tpu.memory_space<vmem>>, %arg3: memref<1x128xf32, #tpu.memory_space<vmem>>, %arg4: memref<1x128xf32, #tpu.memory_space<vmem>>, %arg5: memref<16x128xbf16, #tpu.memory_space<vmem>>) attributes {dimension_semantics = [#tpu.dimension_semantics<parallel>], iteration_bounds = array<i64: 2>, scalar_prefetch = 0 : i64, scratch_operands = 0 : i64, tpu.core_type = #tpu.core_type<tc>, window_params = [{transform_indices = @transform_0, window_bounds = array<i64: 16, 256>}, {pipeline_mode = #tpu.pipeline_mode<synchronous>, transform_indices = @transform_1, window_bounds = array<i64: 256, 128>}, {pipeline_mode = #tpu.pipeline_mode<synchronous>, transform_indices = @transform_2, window_bounds = array<i64: 1, 128>}, {pipeline_mode = #tpu.pipeline_mode<synchronous>, transform_indices = @transform_3, window_bounds = array<i64: 1, 128>}, {transform_indices = @transform_4, window_bounds = array<i64: 16, 128>}]} {
    %c0 = arith.constant 0 : index
    %c0_0 = arith.constant 0 : index
    %0 = vector.load %arg1[%c0, %c0_0] : memref<16x256xbf16, #tpu.memory_space<vmem>>, vector<16x256xbf16>
    %c0_1 = arith.constant 0 : index
    %c0_2 = arith.constant 0 : index
    %1 = vector.load %arg2[%c0_1, %c0_2] : memref<256x128xbf16, #tpu.memory_space<vmem>>, vector<256x128xbf16>
    %cst = arith.constant dense<0.000000e+00> : vector<16x128xf32>
    %2 = tpu.matmul %0, %1, %cst {dimension_numbers = #tpu.dot_dimension_numbers<[1], [0], [0], [1], [0, 0, 1, 1], [], []>} : vector<16x256xbf16>, vector<256x128xbf16>, vector<16x128xf32> -> vector<16x128xf32>
    %c0_3 = arith.constant 0 : index
    %c0_4 = arith.constant 0 : index
    %3 = vector.load %arg3[%c0_3, %c0_4] : memref<1x128xf32, #tpu.memory_space<vmem>>, vector<1x128xf32>
    %4 = vector.broadcast %3 : vector<1x128xf32> to vector<16x128xf32>
    %5 = arith.mulf %2, %4 : vector<16x128xf32>
    %c0_5 = arith.constant 0 : index
    %c0_6 = arith.constant 0 : index
    %6 = vector.load %arg4[%c0_5, %c0_6] : memref<1x128xf32, #tpu.memory_space<vmem>>, vector<1x128xf32>
    %7 = vector.broadcast %6 : vector<1x128xf32> to vector<16x128xf32>
    %8 = arith.addf %5, %7 : vector<16x128xf32>
    %cst_7 = arith.constant 2.000000e-01 : f32
    %9 = vector.broadcast %cst_7 : f32 to vector<16x128xf32>
    %10 = arith.mulf %9, %8 : vector<16x128xf32>
    %11 = arith.maximumf %8, %10 : vector<16x128xf32>
    %12 = arith.truncf %11 : vector<16x128xf32> to vector<16x128xbf16>
    %c0_8 = arith.constant 0 : index
    %c0_9 = arith.constant 0 : index
    %13 = vector.load %arg5[%c0_8, %c0_9] : memref<16x128xbf16, #tpu.memory_space<vmem>>, vector<16x128xbf16>
    tpu.vector_store %arg5[%c0_8, %c0_9], %12 {strides = array<i32>} : memref<16x128xbf16, #tpu.memory_space<vmem>>, vector<16x128xbf16>,
    return
  }
  func.func @transform_0(%arg0: i32) -> (i32, i32) {
    %c0_i32 = arith.constant 0 : i32
    %c0_i32_0 = arith.constant 0 : i32
    return %arg0, %c0_i32 : i32, i32
  }
  func.func @transform_1(%arg0: i32) -> (i32, i32) {
    %c0_i32 = arith.constant 0 : i32
    %c0_i32_0 = arith.constant 0 : i32
    %c0_i32_1 = arith.constant 0 : i32
    return %c0_i32, %c0_i32_0 : i32, i32
  }
  func.func @transform_2(%arg0: i32) -> (i32, i32) {
    %c0_i32 = arith.constant 0 : i32
    %c0_i32_0 = arith.constant 0 : i32
    %c0_i32_1 = arith.constant 0 : i32
    return %c0_i32, %c0_i32_0 : i32, i32
  }
  func.func @transform_3(%arg0: i32) -> (i32, i32) {
    %c0_i32 = arith.constant 0 : i32
    %c0_i32_0 = arith.constant 0 : i32
    %c0_i32_1 = arith.constant 0 : i32
    return %c0_i32, %c0_i32_0 : i32, i32
  }
  func.func @transform_4(%arg0: i32) -> (i32, i32) {
    %c0_i32 = arith.constant 0 : i32
    %c0_i32_0 = arith.constant 0 : i32
    return %arg0, %c0_i32 : i32, i32
  }
}

module attributes {stable_mosaic.version = 11 : i64} {
  func.func @_matmul_act_kernel(%arg0: i32, %arg1: memref<16x512xbf16, #tpu.memory_space<vmem>>, %arg2: memref<512x128xbf16, #tpu.memory_space<vmem>>, %arg3: memref<16x128xf32, #tpu.memory_space<vmem>>) attributes {dimension_semantics = [#tpu.dimension_semantics<parallel>], iteration_bounds = array<i64: 1>, scalar_prefetch = 0 : i64, scratch_operands = 0 : i64, tpu.core_type = #tpu.core_type<tc>, window_params = [{transform_indices = @transform_0, window_bounds = array<i64: 16, 512>}, {pipeline_mode = #tpu.pipeline_mode<synchronous>, transform_indices = @transform_1, window_bounds = array<i64: 512, 128>}, {transform_indices = @transform_2, window_bounds = array<i64: 16, 128>}]} {
    %c0 = arith.constant 0 : index
    %c0_0 = arith.constant 0 : index
    %0 = vector.load %arg1[%c0, %c0_0] : memref<16x512xbf16, #tpu.memory_space<vmem>>, vector<16x512xbf16>
    %c0_1 = arith.constant 0 : index
    %c0_2 = arith.constant 0 : index
    %1 = vector.load %arg2[%c0_1, %c0_2] : memref<512x128xbf16, #tpu.memory_space<vmem>>, vector<512x128xbf16>
    %cst = arith.constant dense<0.000000e+00> : vector<16x128xf32>
    %2 = tpu.matmul %0, %1, %cst {dimension_numbers = #tpu.dot_dimension_numbers<[1], [0], [0], [1], [0, 0, 1, 1], [], []>} : vector<16x512xbf16>, vector<512x128xbf16>, vector<16x128xf32> -> vector<16x128xf32>
    %cst_3 = arith.constant 0.000000e+00 : f32
    %3 = vector.broadcast %cst_3 : f32 to vector<16x128xf32>
    %4 = arith.subf %3, %2 : vector<16x128xf32>
    %5 = math.exp %4 : vector<16x128xf32>
    %cst_4 = arith.constant 1.000000e+00 : f32
    %6 = vector.broadcast %cst_4 : f32 to vector<16x128xf32>
    %7 = arith.addf %6, %5 : vector<16x128xf32>
    %8 = tpu.reciprocal %7 {approx = true} : vector<16x128xf32> -> vector<16x128xf32>
    %c0_5 = arith.constant 0 : index
    %c0_6 = arith.constant 0 : index
    %9 = vector.load %arg3[%c0_5, %c0_6] : memref<16x128xf32, #tpu.memory_space<vmem>>, vector<16x128xf32>
    tpu.vector_store %arg3[%c0_5, %c0_6], %8 {strides = array<i32>} : memref<16x128xf32, #tpu.memory_space<vmem>>, vector<16x128xf32>,
    return
  }
  func.func @transform_0(%arg0: i32) -> (i32, i32) {
    %c0_i32 = arith.constant 0 : i32
    %c0_i32_0 = arith.constant 0 : i32
    return %arg0, %c0_i32 : i32, i32
  }
  func.func @transform_1(%arg0: i32) -> (i32, i32) {
    %c0_i32 = arith.constant 0 : i32
    %c0_i32_0 = arith.constant 0 : i32
    %c0_i32_1 = arith.constant 0 : i32
    return %c0_i32, %c0_i32_0 : i32, i32
  }
  func.func @transform_2(%arg0: i32) -> (i32, i32) {
    %c0_i32 = arith.constant 0 : i32
    %c0_i32_0 = arith.constant 0 : i32
    return %arg0, %c0_i32 : i32, i32
  }
}

</mosaic_0001>

<bundles_post_ra>
// kernel: discriminator_forward.6
= control target key start
LH: loop header
LB: loop body
LE: loop exit
PB: predicated region body
PF: predicated region fallthrough
CT: control target
= control target key end

     0   :  { %s708_s9 = smov 0   ;;  %s759_s0 = inlined_call_operand.vmem [shape: bf16[512,48], index: 0, kind: input, shape index: {}]   ;;  %s760_s1 = inlined_call_operand.vmem [shape: bf16[48,128], index: 1, kind: input, shape index: {}]   ;;  %s761_s2 = inlined_call_operand.vmem [shape: bf16[512,128], index: 2, kind: output, shape index: {}]  }
   0x1 LB: > { %s518_s10 = sadd.s32 4294967295, %s691_s9   ;;  %p522_p0 = scmp.ge.s32.totalorder %s691_s9, 1  ;;  %s691_s9 = sphi %s708_s9, %s12_s9  }
   0x2   : > { %p113_p1 = scmp.lt.s32.totalorder %s691_s9, 5 }
   0x4   : > { %p114_p2 = pnand %p522_p0, %p113_p1 }
   0x5   : > { %s523_s13 = sshll.u32 (!%p114_p2), %s518_s10, 4 }
   0x6   : > { %117 = sbr.rel (%p114_p2) target bundleno = 238 (0xee), region = 28  ;;  %p136_p3 = scmp.lt.s32.totalorder (!%p114_p2), %s523_s13, 63 }
   0xb   : > { %v674_v0 = vld [vmem:[%s760_s1 + $0x10] sm:$0xff]   ;;  %v675_v1 = vld [vmem:[%s760_s1 + $0x8] sm:$0xff]   ;;  %s763_s13 = smov (!%p136_p3, %s523_s13), 63  ;;  %v676_v2 = vld [vmem:[%s760_s1] sm:$0xff]   ;;  %vm228_vm0 = vcmask 392192  }
   0xc   : > { %638 = vmatprep.subr.bf16.mxu0 %v674_v0  ;;  %660 = vmatprep.subr.bf16.mxu1 %v674_v0  ;;  %s524_s18 = sshll.u32 %s763_s13, 2 }
   0xd   : > { %639 = vmatpush3.bf16.msra.mxu0 %v674_v0  ;;  %663 = vmatpush3.bf16.msra.mxu1 %v674_v0  ;;  %s139_s21 = scalar_lea.vmem %s759_s0, %s524_s18  ;;  %s746_s24 = scalar_lea.vmem %s761_s2, %s524_s18 }
   0xe   : > { %640 = vmatprep.subr.bf16.mxu0 %v675_v1  ;;  %661 = vmatprep.subr.bf16.mxu1 %v675_v1  ;;  %v677_v3 = vld [vmem:[%s139_s21] sm:$0xff]   ;;  %v679_v5 = vld [vmem:[%s139_s21 + $0x8] sm:$0xff]   ;;  %v681_v7 = vld [vmem:[%s139_s21 + $0x10] sm:$0xff]  }
   0xf   : > { %v678_v4 = vld [vmem:[%s139_s21 + $0x20] sm:$0xff]   ;;  %644 = vmatprep.mubr.msk.bf16.mxu0 %vm228_vm0, %v677_v3  ;;  %v680_v6 = vld [vmem:[%s139_s21 + $0x28] sm:$0xff]   ;;  %v682_v8 = vld [vmem:[%s139_s21 + $0x30] sm:$0xff]  }
  0x10   : > { %652 = vmatprep.mubr.msk.bf16.mxu1 %vm228_vm0, %v678_v4  ;;  %v683_v9 = vld [vmem:[%s139_s21 + $0x18] sm:$0xff]  }
  0x11   : > { %641 = vmatpush3.bf16.msra.mxu0 %v675_v1  ;;  %664 = vmatpush3.bf16.msra.mxu1 %v675_v1  ;;  %v684_v10 = vld [vmem:[%s139_s21 + $0x38] sm:$0xff]  }
  0x12   : > { %642 = vmatprep.subr.bf16.mxu0 %v676_v2  ;;  %662 = vmatprep.subr.bf16.mxu1 %v676_v2 }
  0x15   : > { %643 = vmatpush3.bf16.msra.mxu0 %v676_v2  ;;  %665 = vmatpush3.bf16.msra.mxu1 %v676_v2 }
  0x18   : > { %645 = vmatmul.mubr.msk.bf16.vlgmr.msra.gmra.mxu0 %vm228_vm0, %v679_v5  ;;  %653 = vmatmul.mubr.msk.bf16.vlgmr.msra.gmra.mxu1 %vm228_vm0, %v680_v6 }
  0x19   : > { %648 = vmatprep.mubr.msk.bf16.mxu0 %vm228_vm0, %v681_v7  ;;  %656 = vmatprep.mubr.msk.bf16.mxu1 %vm228_vm0, %v682_v8 }
  0x20   : > { %649 = vmatmul.mubr.msk.bf16.gmra.mxu0 %vm228_vm0, %v683_v9  ;;  %657 = vmatmul.mubr.msk.bf16.gmra.mxu1 %vm228_vm0, %v684_v10 }
  0xd8   : > { %v646_v11 = vpop.f32.mrf.mxu0  ;;  %v654_v12 = vpop.f32.mrf.mxu1 }
  0xd9   : > { %v352_v13 = vmul.f32 0.2, %v646_v11  ;;  %v360_v14 = vmul.f32 0.2, %v654_v12 }
  0xda   : > { %v287_v15 = vpop.f32.mrf.mxu0  ;;  %v319_v16 = vpop.f32.mrf.mxu1 }
  0xdb   : > { %v350_v17 = vmul.f32 0.2, %v287_v15  ;;  %v358_v18 = vmul.f32 0.2, %v319_v16  ;;  %v368_v23 = vmax.f32 %v646_v11, %v352_v13  ;;  %v376_v24 = vmax.f32 %v654_v12, %v360_v14 }
  0xdc   : > { %v647_v19 = vpop.f32.mrf.mxu0  ;;  %v655_v20 = vpop.f32.mrf.mxu1 }
  0xdd   : > { %v353_v21 = vmul.f32 0.2, %v647_v19  ;;  %v361_v22 = vmul.f32 0.2, %v655_v20  ;;  %v366_v31 = vmax.f32 %v287_v15, %v350_v17  ;;  %v374_v32 = vmax.f32 %v319_v16, %v358_v18 }
  0xde   : > { %v290_v25 = vpop.f32.mrf.mxu0  ;;  %v322_v26 = vpop.f32.mrf.mxu1 }
  0xdf   : > { %v369_v27 = vmax.f32 %v647_v19, %v353_v21  ;;  %v377_v28 = vmax.f32 %v655_v20, %v361_v22  ;;  %v351_v29 = vmul.f32 0.2, %v290_v25  ;;  %v359_v30 = vmul.f32 0.2, %v322_v26 }
  0xe0   : > { %v650_v33 = vpop.f32.mrf.mxu0  ;;  %v658_v34 = vpop.f32.mrf.mxu1 }
  0xe1   : > { %v588_v35 = vpack.c.bf16 %v369_v27, %v368_v23  ;;  %v608_v36 = vpack.c.bf16 %v377_v28, %v376_v24  ;;  %v367_v37 = vmax.f32 %v290_v25, %v351_v29  ;;  %v375_v38 = vmax.f32 %v322_v26, %v359_v30 }
  0xe2   : > { %v356_v39 = vmul.f32 0.2, %v650_v33  ;;  %v364_v40 = vmul.f32 0.2, %v658_v34  ;;  %v303_v41 = vpop.f32.mrf.mxu0  ;;  %v335_v42 = vpop.f32.mrf.mxu1 }
  0xe3   : > { %620 = vst [vmem:[%s746_s24 + $0x8] sm:$0xff] %v588_v35   ;;  %624 = vst [vmem:[%s746_s24 + $0x28] sm:$0xff] %v608_v36   ;;  %v583_v43 = vpack.c.bf16 %v367_v37, %v366_v31  ;;  %v603_v44 = vpack.c.bf16 %v375_v38, %v374_v32  ;;  %v354_v45 = vmul.f32 0.2, %v303_v41  ;;  %v362_v46 = vmul.f32 0.2, %v335_v42 }
  0xe4   : > { %v651_v47 = vpop.f32.mrf.mxu0  ;;  %v659_v48 = vpop.f32.mrf.mxu1  ;;  %v372_v51 = vmax.f32 %v650_v33, %v356_v39  ;;  %v380_v52 = vmax.f32 %v658_v34, %v364_v40 }
  0xe5   : > { %584 = vst [vmem:[%s746_s24] sm:$0xff] %v583_v43   ;;  %623 = vst [vmem:[%s746_s24 + $0x20] sm:$0xff] %v603_v44   ;;  %v357_v49 = vmul.f32 0.2, %v651_v47  ;;  %v365_v50 = vmul.f32 0.2, %v659_v48  ;;  %v370_v59 = vmax.f32 %v303_v41, %v354_v45  ;;  %v378_v60 = vmax.f32 %v335_v42, %v362_v46 }
  0xe6   : > { %v306_v53 = vpop.f32.mrf.mxu0  ;;  %v338_v54 = vpop.f32.mrf.mxu1 }
  0xe7   : > { %v373_v55 = vmax.f32 %v651_v47, %v357_v49  ;;  %v381_v56 = vmax.f32 %v659_v48, %v365_v50  ;;  %v355_v57 = vmul.f32 0.2, %v306_v53  ;;  %v363_v58 = vmul.f32 0.2, %v338_v54 }
  0xe9   : > { %v598_v61 = vpack.c.bf16 %v373_v55, %v372_v51  ;;  %v618_v62 = vpack.c.bf16 %v381_v56, %v380_v52  ;;  %v371_v63 = vmax.f32 %v306_v53, %v355_v57  ;;  %v379_v0 = vmax.f32 %v338_v54, %v363_v58 }
  0xeb   : > { %622 = vst [vmem:[%s746_s24 + $0x18] sm:$0xff] %v598_v61   ;;  %626 = vst [vmem:[%s746_s24 + $0x38] sm:$0xff] %v618_v62   ;;  %v593_v1 = vpack.c.bf16 %v371_v63, %v370_v59  ;;  %v613_v2 = vpack.c.bf16 %v379_v0, %v378_v60 }
  0xed   : > { %621 = vst [vmem:[%s746_s24 + $0x10] sm:$0xff] %v593_v1   ;;  %625 = vst [vmem:[%s746_s24 + $0x30] sm:$0xff] %v613_v2  }
  0xee PF: > { %s12_s9 = sadd.s32 1, %s691_s9  }
  0xef   : > { %p9_p4 = scmp.ge.s32.totalorder %s12_s9, 6  }
  0xf1   :  { %11 = sbr.rel (!%p9_p4) target bundleno = 1 (0x1), region = 58 }

// kernel: discriminator_forward.7
= control target key start
LH: loop header
LB: loop body
LE: loop exit
PB: predicated region body
PF: predicated region fallthrough
CT: control target
= control target key end

     0   :  { %s442_s9 = smov 0   ;;  %s488_s0 = inlined_call_operand.vmem [shape: bf16[128,128], index: 0, kind: input, shape index: {}]   ;;  %s489_s1 = inlined_call_operand.vmem [shape: bf16[128,128], index: 1, kind: input, shape index: {}]   ;;  %s490_s2 = inlined_call_operand.vmem [shape: f32[32,128], index: 2, kind: output, shape index: {}]  }
   0x1 LB: > { %s448_s10 = sadd.s32 4294967295, %s425_s9   ;;  %p355_p0 = scmp.ge.s32.totalorder %s425_s9, 1  ;;  %s425_s9 = sphi %s442_s9, %s12_s9  }
   0x2   : > { %p113_p1 = scmp.lt.s32.totalorder %s425_s9, 5 }
   0x4   : > { %p114_p2 = pnand %p355_p0, %p113_p1 }
   0x5   : > { %s356_s13 = sshll.u32 (!%p114_p2), %s448_s10, 2  ;;  %p140_p4 = scmp.lt.s32.totalorder (!%p114_p2), %s448_s10, 3 }
   0x6   : > { %117 = sbr.rel (%p114_p2) target bundleno = 264 (0x108), region = 28  ;;  %p135_p3 = scmp.lt.s32.totalorder (!%p114_p2), %s356_s13, 15 }
   0xb   : > { %v409_v0 = vld [vmem:[%s489_s1 + $0x38] sm:$0xff]   ;;  %v410_v1 = vld [vmem:[%s489_s1 + $0x30] sm:$0xff]   ;;  %s492_s13 = smov (!%p135_p3, %s356_s13), 15  ;;  %v411_v2 = vld [vmem:[%s489_s1 + $0x28] sm:$0xff]   ;;  %s494_s10 = smov (!%p140_p4, %s448_s10), 3 }
   0xc   : > { %381 = vmatprep.subr.bf16.mxu0 %v409_v0  ;;  %s357_s18 = sshll.u32 %s492_s13, 2  ;;  %v412_v3 = vld [vmem:[%s489_s1 + $0x20] sm:$0xff]   ;;  %v413_v5 = vld [vmem:[%s489_s1 + $0x18] sm:$0xff]   ;;  %v414_v6 = vld [vmem:[%s489_s1 + $0x10] sm:$0xff]   ;;  %s358_s4 = sshll.u32 %s494_s10, 3 }
   0xd   : > { %382 = vmatpush3.bf16.msra.mxu0 %v409_v0  ;;  %s138_s21 = scalar_lea.vmem %s488_s0, %s357_s18  ;;  %v415_v7 = vld [vmem:[%s489_s1 + $0x8] sm:$0xff]   ;;  %v416_v8 = vld [vmem:[%s489_s1] sm:$0xff]   ;;  %s143_s7 = scalar_lea.vmem %s490_s2, %s358_s4 }
   0xe   : > { %383 = vmatprep.subr.bf16.mxu0 %v410_v1  ;;  %v417_v4 = vld [vmem:[%s138_s21] sm:$0xff]   ;;  %v418_v9 = vld [vmem:[%s138_s21 + $0x8] sm:$0xff]  }
   0xf   : > { %397 = vmatprep.mubr.bf16.mxu0 %v417_v4 }
  0x11   : > { %384 = vmatpush3.bf16.msra.mxu0 %v410_v1 }
  0x12   : > { %385 = vmatprep.subr.bf16.mxu0 %v411_v2 }
  0x15   : > { %386 = vmatpush3.bf16.msra.mxu0 %v411_v2 }
  0x16   : > { %387 = vmatprep.subr.bf16.mxu0 %v412_v3 }
  0x19   : > { %388 = vmatpush3.bf16.msra.mxu0 %v412_v3 }
  0x1a   : > { %389 = vmatprep.subr.bf16.mxu0 %v413_v5 }
  0x1d   : > { %390 = vmatpush3.bf16.msra.mxu0 %v413_v5 }
  0x1e   : > { %391 = vmatprep.subr.bf16.mxu0 %v414_v6 }
  0x21   : > { %392 = vmatpush3.bf16.msra.mxu0 %v414_v6 }
  0x22   : > { %393 = vmatprep.subr.bf16.mxu0 %v415_v7 }
  0x25   : > { %394 = vmatpush3.bf16.msra.mxu0 %v415_v7 }
  0x26   : > { %395 = vmatprep.subr.bf16.mxu0 %v416_v8 }
  0x29   : > { %396 = vmatpush3.bf16.msra.mxu0 %v416_v8 }
  0x2c   : > { %398 = vmatmul.mubr.bf16.vlgmr.msra.gmra.mxu0 %v418_v9 }
  0xec   : > { %v399_v10 = vpop.f32.mrf.mxu0 }
  0xed   : > { %v286_v17 = vmul.f32 %v399_v10, %v399_v10 }
  0xee   : > { %v259_v11 = vpop.f32.mrf.mxu0 }
  0xef   : > { %v284_v14 = vmul.f32 %v259_v11, %v259_v11 }
  0xf0   : > { %v400_v12 = vpop.f32.mrf.mxu0 }
  0xf1   : > { %v287_v20 = vmul.f32 %v400_v12, %v400_v12 }
  0xf2   : > { %v262_v13 = vpop.f32.mrf.mxu0 }
  0xf3   : > { %v274_v15 = vadd.f32 %v262_v13, %v259_v11  ;;  %v285_v16 = vmul.f32 %v262_v13, %v262_v13 }
  0xf5   : > { %v275_v18 = vadd.f32 %v399_v10, %v274_v15  ;;  %v288_v19 = vadd.f32 %v285_v16, %v284_v14 }
  0xf7   : > { %v276_v21 = vadd.f32 %v400_v12, %v275_v18  ;;  %v289_v22 = vadd.f32 %v288_v19, %v286_v17 }
  0xf9   : > { %v277_v23 = vrot.slane %v276_v21, 4  ;;  %v290_v24 = vadd.f32 %v289_v22, %v287_v20 }
  0xfb   : > { %v278_v25 = vadd.f32 %v277_v23, %v276_v21  ;;  %v291_v26 = vrot.slane %v290_v24, 4 }
  0xfd   : > { %v279_v27 = vrot.slane %v278_v25, 2  ;;  %v292_v28 = vadd.f32 %v291_v26, %v290_v24 }
  0xff   : > { %v280_v29 = vadd.f32 %v279_v27, %v278_v25  ;;  %v293_v30 = vrot.slane %v292_v28, 2 }
 0x101   : > { %v281_v31 = vrot.slane %v280_v29, 1  ;;  %v294_v32 = vadd.f32 %v293_v30, %v292_v28 }
 0x103   : > { %v282_v33 = vadd.f32 %v281_v31, %v280_v29  ;;  %v295_v34 = vrot.slane %v294_v32, 1 }
 0x105   : > { %283 = vst [vmem:[%s143_s7] sm:$0x1] %v282_v33  ;;  %v296_v35 = vadd.f32 %v295_v34, %v294_v32 }
 0x107   : > { %297 = vst [vmem:[%s143_s7 + $0x1] sm:$0x1] %v296_v35 }
 0x108 PF: > { %s12_s9 = sadd.s32 1, %s425_s9  }
 0x109   : > { %p9_p5 = scmp.ge.s32.totalorder %s12_s9, 6  }
 0x10b   :  { %11 = sbr.rel (!%p9_p5) target bundleno = 1 (0x1), region = 58 }

// kernel: discriminator_forward.8
= control target key start
LH: loop header
LB: loop body
LE: loop exit
PB: predicated region body
PF: predicated region fallthrough
CT: control target
= control target key end

     0   :  { %s560_s15 = smov 0   ;;  %s614_s0 = inlined_call_operand.vmem [shape: bf16[128,128], index: 0, kind: input, shape index: {}]   ;;  %s615_s1 = inlined_call_operand.vmem [shape: bf16[128,128], index: 1, kind: input, shape index: {}]   ;;  %s616_s2 = inlined_call_operand.vmem [shape: f32[1,128], index: 2, kind: input, shape index: {}]   ;;  %s617_s3 = inlined_call_operand.vmem [shape: f32[1,128], index: 3, kind: input, shape index: {}]   ;;  %s618_s4 = inlined_call_operand.vmem [shape: bf16[128,128], index: 4, kind: output, shape index: {}]  }
   0x1 LB: > { %s437_s16 = sadd.s32 4294967295, %s533_s15   ;;  %p441_p0 = scmp.ge.s32.totalorder %s533_s15, 1  ;;  %s533_s15 = sphi %s560_s15, %s14_s15  }
   0x2   : > { %p163_p1 = scmp.lt.s32.totalorder %s533_s15, 5 }
   0x4   : > { %p164_p2 = pnand %p441_p0, %p163_p1 }
   0x5   : > { %s442_s19 = sshll.u32 (!%p164_p2), %s437_s16, 2 }
   0x6   : > { %167 = sbr.rel (%p164_p2) target bundleno = 254 (0xfe), region = 36  ;;  %p190_p3 = scmp.lt.s32.totalorder (!%p164_p2), %s442_s19, 15 }
   0xb   : > { %v517_v0 = vld [vmem:[%s615_s1 + $0x38] sm:$0xff]   ;;  %v518_v1 = vld [vmem:[%s615_s1 + $0x30] sm:$0xff]   ;;  %s620_s19 = smov (!%p190_p3, %s442_s19), 15  ;;  %v519_v2 = vld [vmem:[%s615_s1 + $0x28] sm:$0xff]  }
   0xc   : > { %489 = vmatprep.subr.bf16.mxu0 %v517_v0  ;;  %s443_s24 = sshll.u32 %s620_s19, 2  ;;  %v520_v3 = vld [vmem:[%s615_s1 + $0x20] sm:$0xff]   ;;  %v521_v5 = vld [vmem:[%s615_s1 + $0x18] sm:$0xff]   ;;  %v522_v6 = vld [vmem:[%s615_s1 + $0x10] sm:$0xff]  }
   0xd   : > { %490 = vmatpush3.bf16.msra.mxu0 %v517_v0  ;;  %s193_s27 = scalar_lea.vmem %s614_s0, %s443_s24  ;;  %v523_v7 = vld [vmem:[%s615_s1 + $0x8] sm:$0xff]   ;;  %v524_v8 = vld [vmem:[%s615_s1] sm:$0xff]   ;;  %s199_s20 = scalar_lea.vmem %s618_s4, %s443_s24 }
   0xe   : > { %491 = vmatprep.subr.bf16.mxu0 %v518_v1  ;;  %v525_v4 = vld [vmem:[%s193_s27] sm:$0xff]   ;;  %v526_v9 = vld [vmem:[%s193_s27 + $0x8] sm:$0xff]  }
   0xf   : > { %505 = vmatprep.mubr.bf16.mxu0 %v525_v4  ;;  %v456_v10 = vld [vmem:[%s616_s2] ss:$0 sm:$0xff] }
  0x10   : > { %v457_v12 = vld [vmem:[%s617_s3] ss:$0 sm:$0xff] }
  0x11   : > { %492 = vmatpush3.bf16.msra.mxu0 %v518_v1 }
  0x12   : > { %493 = vmatprep.subr.bf16.mxu0 %v519_v2 }
  0x15   : > { %494 = vmatpush3.bf16.msra.mxu0 %v519_v2 }
  0x16   : > { %495 = vmatprep.subr.bf16.mxu0 %v520_v3 }
  0x19   : > { %496 = vmatpush3.bf16.msra.mxu0 %v520_v3 }
  0x1a   : > { %497 = vmatprep.subr.bf16.mxu0 %v521_v5 }
  0x1d   : > { %498 = vmatpush3.bf16.msra.mxu0 %v521_v5 }
  0x1e   : > { %499 = vmatprep.subr.bf16.mxu0 %v522_v6 }
  0x21   : > { %500 = vmatpush3.bf16.msra.mxu0 %v522_v6 }
  0x22   : > { %501 = vmatprep.subr.bf16.mxu0 %v523_v7 }
  0x25   : > { %502 = vmatpush3.bf16.msra.mxu0 %v523_v7 }
  0x26   : > { %503 = vmatprep.subr.bf16.mxu0 %v524_v8 }
  0x29   : > { %504 = vmatpush3.bf16.msra.mxu0 %v524_v8 }
  0x2c   : > { %506 = vmatmul.mubr.bf16.vlgmr.msra.gmra.mxu0 %v526_v9 }
  0xec   : > { %v507_v11 = vpop.f32.mrf.mxu0 }
  0xed   : > { %v340_v13 = vmul.f32 %v507_v11, %v456_v10 }
  0xee   : > { %v316_v14 = vpop.f32.mrf.mxu0 }
  0xef   : > { %v351_v15 = vadd.f32 %v457_v12, %v340_v13  ;;  %v338_v16 = vmul.f32 %v456_v10, %v316_v14 }
  0xf0   : > { %v508_v17 = vpop.f32.mrf.mxu0 }
  0xf1   : > { %v349_v18 = vadd.f32 %v457_v12, %v338_v16  ;;  %v341_v19 = vmul.f32 %v508_v17, %v456_v10  ;;  %v355_v21 = vmul.f32 0.2, %v351_v15 }
  0xf2   : > { %v319_v20 = vpop.f32.mrf.mxu0 }
  0xf3   : > { %v352_v22 = vadd.f32 %v457_v12, %v341_v19  ;;  %v339_v23 = vmul.f32 %v456_v10, %v319_v20  ;;  %v353_v24 = vmul.f32 0.2, %v349_v18  ;;  %v359_v27 = vmax.f32 %v351_v15, %v355_v21 }
  0xf5   : > { %v356_v25 = vmul.f32 0.2, %v352_v22  ;;  %v350_v26 = vadd.f32 %v457_v12, %v339_v23  ;;  %v357_v30 = vmax.f32 %v349_v18, %v353_v24 }
  0xf7   : > { %v360_v28 = vmax.f32 %v352_v22, %v356_v25  ;;  %v354_v29 = vmul.f32 0.2, %v350_v26 }
  0xf9   : > { %v476_v31 = vpack.c.bf16 %v360_v28, %v359_v27  ;;  %v358_v32 = vmax.f32 %v350_v26, %v354_v29 }
  0xfb   : > { %478 = vst [vmem:[%s199_s20 + $0x8] sm:$0xff] %v476_v31   ;;  %v471_v33 = vpack.c.bf16 %v358_v32, %v357_v30 }
  0xfd   : > { %472 = vst [vmem:[%s199_s20] sm:$0xff] %v471_v33  }
  0xfe PF: > { %s14_s15 = sadd.s32 1, %s533_s15  }
  0xff   : > { %p11_p4 = scmp.ge.s32.totalorder %s14_s15, 6  }
 0x101   :  { %13 = sbr.rel (!%p11_p4) target bundleno = 1 (0x1), region = 66 }

// kernel: discriminator_forward.9
= control target key start
LH: loop header
LB: loop body
LE: loop exit
PB: predicated region body
PF: predicated region fallthrough
CT: control target
= control target key end

     0   :  { %s502_s9 = smov 0   ;;  %s572_s0 = inlined_call_operand.vmem [shape: bf16[32,256], index: 0, kind: input, shape index: {}]   ;;  %s573_s1 = inlined_call_operand.vmem [shape: bf16[256,128], index: 1, kind: input, shape index: {}]   ;;  %s574_s2 = inlined_call_operand.vmem [shape: f32[16,128], index: 2, kind: output, shape index: {}]  }
   0x1 LB: > { %s508_s10 = sadd.s32 4294967295, %s485_s9   ;;  %p404_p0 = scmp.ge.s32.totalorder %s485_s9, 1  ;;  %s485_s9 = sphi %s502_s9, %s12_s9  }
   0x2   : > { %p114_p1 = scmp.lt.s32.totalorder %s485_s9, 3 }
   0x4   : > { %p115_p2 = pnand %p404_p0, %p114_p1 }
   0x5   : > { %s405_s13 = sshll.u32 (!%p115_p2), %s508_s10, 1  ;;  %p143_p4 = scmp.lt.s32.totalorder (!%p115_p2), %s508_s10, 1 }
   0x6   : > { %118 = sbr.rel (%p115_p2) target bundleno = 262 (0x106), region = 28  ;;  %p137_p3 = scmp.lt.s32.totalorder (!%p115_p2), %s405_s13, 3 }
   0xb   : > { %v460_v0 = vld [vmem:[%s573_s1 + $0x78] sm:$0xff]   ;;  %v462_v2 = vld [vmem:[%s573_s1 + $0x70] sm:$0xff]   ;;  %v464_v4 = vld [vmem:[%s573_s1 + $0x68] sm:$0xff]   ;;  %s576_s13 = smov (!%p137_p3, %s405_s13), 3  ;;  %s578_s10 = smov (!%p143_p4, %s508_s10), 1 }
   0xc   : > { %v461_v1 = vld [vmem:[%s573_s1 + $0x38] sm:$0xff]   ;;  %430 = vmatprep.subr.bf16.mxu0 %v460_v0  ;;  %v463_v3 = vld [vmem:[%s573_s1 + $0x30] sm:$0xff]   ;;  %v465_v5 = vld [vmem:[%s573_s1 + $0x28] sm:$0xff]   ;;  %s429_s28 = sshll.u32 %s576_s13, 3  ;;  %s408_s22 = sshll.u32 %s578_s10, 3 }
   0xd   : > { %431 = vmatpush3.bf16.msra.mxu0 %v461_v1  ;;  %v466_v6 = vld [vmem:[%s573_s1 + $0x60] sm:$0xff]   ;;  %v468_v8 = vld [vmem:[%s573_s1 + $0x58] sm:$0xff]   ;;  %s141_s5 = scalar_lea.vmem %s572_s0, %s429_s28  ;;  %v470_v10 = vld [vmem:[%s573_s1 + $0x50] sm:$0xff]   ;;  %s146_s25 = scalar_lea.vmem %s574_s2, %s408_s22 }
   0xe   : > { %432 = vmatprep.subr.bf16.mxu0 %v462_v2  ;;  %v467_v7 = vld [vmem:[%s573_s1 + $0x20] sm:$0xff]   ;;  %v469_v9 = vld [vmem:[%s573_s1 + $0x18] sm:$0xff]   ;;  %v471_v12 = vld [vmem:[%s573_s1 + $0x10] sm:$0xff]  }
   0xf   : > { %v478_v11 = vld [vmem:[%s141_s5 + $0x4] ss:$8 sps:$4 sm:$0xff]   ;;  %v476_v17 = vld [vmem:[%s141_s5] ss:$8 sps:$4 sm:$0xff]  }
  0x10   : > { %320 = vmatprep.mubr.bf16.mxu0 %v478_v11  ;;  %v472_v13 = vld [vmem:[%s573_s1 + $0x48] sm:$0xff]   ;;  %v474_v15 = vld [vmem:[%s573_s1 + $0x40] sm:$0xff]  }
  0x11   : > { %433 = vmatpush3.bf16.msra.mxu0 %v463_v3  ;;  %v473_v14 = vld [vmem:[%s573_s1 + $0x8] sm:$0xff]   ;;  %v475_v16 = vld [vmem:[%s573_s1] sm:$0xff]  }
  0x12   : > { %434 = vmatprep.subr.bf16.mxu0 %v464_v4 }
  0x15   : > { %435 = vmatpush3.bf16.msra.mxu0 %v465_v5 }
  0x16   : > { %436 = vmatprep.subr.bf16.mxu0 %v466_v6 }
  0x19   : > { %437 = vmatpush3.bf16.msra.mxu0 %v467_v7 }
  0x1a   : > { %438 = vmatprep.subr.bf16.mxu0 %v468_v8 }
  0x1d   : > { %439 = vmatpush3.bf16.msra.mxu0 %v469_v9 }
  0x1e   : > { %440 = vmatprep.subr.bf16.mxu0 %v470_v10 }
  0x21   : > { %441 = vmatpush3.bf16.msra.mxu0 %v471_v12 }
  0x22   : > { %442 = vmatprep.subr.bf16.mxu0 %v472_v13 }
  0x25   : > { %443 = vmatpush3.bf16.msra.mxu0 %v473_v14 }
  0x26   : > { %444 = vmatprep.subr.bf16.mxu0 %v474_v15 }
  0x29   : > { %445 = vmatpush3.bf16.msra.mxu0 %v475_v16 }
  0x2c   : > { %321 = vmatmul.mubr.bf16.vlgmr.msra.gmra.mxu0 %v476_v17 }
  0xec   : > { %v446_v18 = vpop.f32.mrf.mxu0 }
  0xee   : > { %v447_v19 = vpop.f32.mrf.mxu0 }
  0xef   : > { %v448_v21 = vadd.f32 %v447_v19, %v446_v18 }
  0xf0   : > { %v449_v20 = vpop.f32.mrf.mxu0 }
  0xf1   : > { %v337_v24 = vmul.f32 %v448_v21, %v448_v21 }
  0xf2   : > { %v450_v22 = vpop.f32.mrf.mxu0 }
  0xf3   : > { %v451_v23 = vadd.f32 %v450_v22, %v449_v20 }
  0xf5   : > { %v329_v25 = vadd.f32 %v451_v23, %v448_v21  ;;  %v338_v26 = vmul.f32 %v451_v23, %v451_v23 }
  0xf7   : > { %v330_v27 = vrot.slane %v329_v25, 4  ;;  %v339_v28 = vadd.f32 %v338_v26, %v337_v24 }
  0xf9   : > { %v331_v29 = vadd.f32 %v330_v27, %v329_v25  ;;  %v340_v30 = vrot.slane %v339_v28, 4 }
  0xfb   : > { %v332_v31 = vrot.slane %v331_v29, 2  ;;  %v341_v32 = vadd.f32 %v340_v30, %v339_v28 }
  0xfd   : > { %v333_v33 = vadd.f32 %v332_v31, %v331_v29  ;;  %v342_v34 = vrot.slane %v341_v32, 2 }
  0xff   : > { %v334_v35 = vrot.slane %v333_v33, 1  ;;  %v343_v36 = vadd.f32 %v342_v34, %v341_v32 }
 0x101   : > { %v335_v37 = vadd.f32 %v334_v35, %v333_v33  ;;  %v344_v38 = vrot.slane %v343_v36, 1 }
 0x103   : > { %336 = vst [vmem:[%s146_s25] sm:$0x1] %v335_v37  ;;  %v345_v39 = vadd.f32 %v344_v38, %v343_v36 }
 0x105   : > { %346 = vst [vmem:[%s146_s25 + $0x1] sm:$0x1] %v345_v39 }
 0x106 PF: > { %s12_s9 = sadd.s32 1, %s485_s9  }
 0x107   : > { %p9_p5 = scmp.ge.s32.totalorder %s12_s9, 4  }
 0x109   :  { %11 = sbr.rel (!%p9_p5) target bundleno = 1 (0x1), region = 58 }

// kernel: discriminator_forward.10
= control target key start
LH: loop header
LB: loop body
LE: loop exit
PB: predicated region body
PF: predicated region fallthrough
CT: control target
= control target key end

     0   :  { %s598_s15 = smov 0   ;;  %s673_s0 = inlined_call_operand.vmem [shape: bf16[32,256], index: 0, kind: input, shape index: {}]   ;;  %s674_s1 = inlined_call_operand.vmem [shape: bf16[256,128], index: 1, kind: input, shape index: {}]   ;;  %s675_s2 = inlined_call_operand.vmem [shape: f32[1,128], index: 2, kind: input, shape index: {}]   ;;  %s676_s3 = inlined_call_operand.vmem [shape: f32[1,128], index: 3, kind: input, shape index: {}]   ;;  %s677_s4 = inlined_call_operand.vmem [shape: bf16[32,128], index: 4, kind: output, shape index: {}]  }
   0x1 LB: > { %s474_s16 = sadd.s32 4294967295, %s571_s15   ;;  %p478_p0 = scmp.ge.s32.totalorder %s571_s15, 1  ;;  %s571_s15 = sphi %s598_s15, %s14_s15  }
   0x2   : > { %p164_p1 = scmp.lt.s32.totalorder %s571_s15, 3 }
   0x4   : > { %p165_p2 = pnand %p478_p0, %p164_p1 }
   0x5   : > { %s479_s19 = sshll.u32 (!%p165_p2), %s474_s16, 1 }
   0x6   : > { %168 = sbr.rel (%p165_p2) target bundleno = 256 (0x100), region = 36  ;;  %p192_p3 = scmp.lt.s32.totalorder (!%p165_p2), %s479_s19, 3 }
   0xb   : > { %v546_v0 = vld [vmem:[%s674_s1 + $0x78] sm:$0xff]   ;;  %v548_v2 = vld [vmem:[%s674_s1 + $0x70] sm:$0xff]   ;;  %v550_v4 = vld [vmem:[%s674_s1 + $0x68] sm:$0xff]   ;;  %s679_s19 = smov (!%p192_p3, %s479_s19), 3 }
   0xc   : > { %v547_v1 = vld [vmem:[%s674_s1 + $0x38] sm:$0xff]   ;;  %516 = vmatprep.subr.bf16.mxu0 %v546_v0  ;;  %v549_v3 = vld [vmem:[%s674_s1 + $0x30] sm:$0xff]   ;;  %v551_v5 = vld [vmem:[%s674_s1 + $0x28] sm:$0xff]   ;;  %s508_s8 = sshll.u32 %s679_s19, 3 }
   0xd   : > { %517 = vmatpush3.bf16.msra.mxu0 %v547_v1  ;;  %v552_v6 = vld [vmem:[%s674_s1 + $0x60] sm:$0xff]   ;;  %v554_v8 = vld [vmem:[%s674_s1 + $0x58] sm:$0xff]   ;;  %s196_s13 = scalar_lea.vmem %s673_s0, %s508_s8  ;;  %v556_v10 = vld [vmem:[%s674_s1 + $0x50] sm:$0xff]   ;;  %s483_s8 = sshll.u32 %s679_s19, 2 }
   0xe   : > { %518 = vmatprep.subr.bf16.mxu0 %v548_v2  ;;  %v553_v7 = vld [vmem:[%s674_s1 + $0x20] sm:$0xff]   ;;  %v555_v9 = vld [vmem:[%s674_s1 + $0x18] sm:$0xff]   ;;  %v557_v12 = vld [vmem:[%s674_s1 + $0x10] sm:$0xff]   ;;  %s202_s11 = scalar_lea.vmem %s677_s4, %s483_s8 }
   0xf   : > { %v564_v11 = vld [vmem:[%s196_s13 + $0x4] ss:$8 sps:$4 sm:$0xff]   ;;  %v562_v17 = vld [vmem:[%s196_s13] ss:$8 sps:$4 sm:$0xff]  }
  0x10   : > { %377 = vmatprep.mubr.bf16.mxu0 %v564_v11  ;;  %v558_v13 = vld [vmem:[%s674_s1 + $0x48] sm:$0xff]   ;;  %v560_v15 = vld [vmem:[%s674_s1 + $0x40] sm:$0xff]  }
  0x11   : > { %519 = vmatpush3.bf16.msra.mxu0 %v549_v3  ;;  %v559_v14 = vld [vmem:[%s674_s1 + $0x8] sm:$0xff]   ;;  %v561_v16 = vld [vmem:[%s674_s1] sm:$0xff]  }
  0x12   : > { %520 = vmatprep.subr.bf16.mxu0 %v550_v4  ;;  %v502_v20 = vld [vmem:[%s675_s2] ss:$0 sm:$0xff] }
  0x13   : > { %v503_v22 = vld [vmem:[%s676_s3] ss:$0 sm:$0xff] }
  0x15   : > { %521 = vmatpush3.bf16.msra.mxu0 %v551_v5 }
  0x16   : > { %522 = vmatprep.subr.bf16.mxu0 %v552_v6 }
  0x19   : > { %523 = vmatpush3.bf16.msra.mxu0 %v553_v7 }
  0x1a   : > { %524 = vmatprep.subr.bf16.mxu0 %v554_v8 }
  0x1d   : > { %525 = vmatpush3.bf16.msra.mxu0 %v555_v9 }
  0x1e   : > { %526 = vmatprep.subr.bf16.mxu0 %v556_v10 }
  0x21   : > { %527 = vmatpush3.bf16.msra.mxu0 %v557_v12 }
  0x22   : > { %528 = vmatprep.subr.bf16.mxu0 %v558_v13 }
  0x25   : > { %529 = vmatpush3.bf16.msra.mxu0 %v559_v14 }
  0x26   : > { %530 = vmatprep.subr.bf16.mxu0 %v560_v15 }
  0x29   : > { %531 = vmatpush3.bf16.msra.mxu0 %v561_v16 }
  0x2c   : > { %378 = vmatmul.mubr.bf16.vlgmr.msra.gmra.mxu0 %v562_v17 }
  0xec   : > { %v532_v18 = vpop.f32.mrf.mxu0 }
  0xee   : > { %v533_v19 = vpop.f32.mrf.mxu0 }
  0xef   : > { %v534_v21 = vadd.f32 %v533_v19, %v532_v18 }
  0xf0   : > { %v535_v23 = vpop.f32.mrf.mxu0 }
  0xf1   : > { %v393_v24 = vmul.f32 %v534_v21, %v502_v20 }
  0xf2   : > { %v536_v25 = vpop.f32.mrf.mxu0 }
  0xf3   : > { %v402_v26 = vadd.f32 %v503_v22, %v393_v24  ;;  %v537_v27 = vadd.f32 %v536_v25, %v535_v23 }
  0xf5   : > { %v394_v28 = vmul.f32 %v537_v27, %v502_v20  ;;  %v404_v29 = vmul.f32 0.2, %v402_v26 }
  0xf7   : > { %v403_v30 = vadd.f32 %v503_v22, %v394_v28  ;;  %v406_v32 = vmax.f32 %v402_v26, %v404_v29 }
  0xf9   : > { %v405_v31 = vmul.f32 0.2, %v403_v30 }
  0xfb   : > { %v407_v33 = vmax.f32 %v403_v30, %v405_v31 }
  0xfd   : > { %v514_v34 = vpack.c.bf16 %v407_v33, %v406_v32 }
  0xff   : > { %515 = vst [vmem:[%s202_s11] sm:$0xff] %v514_v34  }
 0x100 PF: > { %s14_s15 = sadd.s32 1, %s571_s15  }
 0x101   : > { %p11_p4 = scmp.ge.s32.totalorder %s14_s15, 4  }
 0x103   :  { %13 = sbr.rel (!%p11_p4) target bundleno = 1 (0x1), region = 66 }

// kernel: discriminator_forward.11
= control target key start
LH: loop header
LB: loop body
LE: loop exit
PB: predicated region body
PF: predicated region fallthrough
CT: control target
= control target key end

     0   :  { %s645_s1 = inlined_call_operand.vmem [shape: bf16[512,128], index: 1, kind: input, shape index: {}]   ;;  %s646_s0 = inlined_call_operand.vmem [shape: bf16[16,512], index: 0, kind: input, shape index: {}]   ;;  %s647_s2 = inlined_call_operand.vmem [shape: f32[16,128], index: 2, kind: output, shape index: {}]  }
   0x1   :  { %v470_v0 = vld [vmem:[%s645_s1 + $0x78] sm:$0xff]   ;;  %v474_v4 = vld [vmem:[%s645_s1 + $0x70] sm:$0xff]   ;;  %v478_v8 = vld [vmem:[%s645_s1 + $0x68] sm:$0xff]  }
   0x2   :  { %v471_v1 = vld [vmem:[%s645_s1 + $0xf8] sm:$0xff]   ;;  %426 = vmatprep.subr.bf16.mxu0 %v470_v0  ;;  %v475_v5 = vld [vmem:[%s645_s1 + $0xf0] sm:$0xff]   ;;  %v479_v9 = vld [vmem:[%s645_s1 + $0xe8] sm:$0xff]  }
   0x3   :  { %v472_v2 = vld [vmem:[%s645_s1 + $0x38] sm:$0xff]   ;;  %448 = vmatprep.subr.bf16.mxu1 %v471_v1  ;;  %v476_v6 = vld [vmem:[%s645_s1 + $0x30] sm:$0xff]   ;;  %v480_v10 = vld [vmem:[%s645_s1 + $0x28] sm:$0xff]  }
   0x4   :  { %v473_v3 = vld [vmem:[%s645_s1 + $0xb8] sm:$0xff]   ;;  %427 = vmatpush3.bf16.msra.mxu0 %v472_v2  ;;  %v477_v7 = vld [vmem:[%s645_s1 + $0xb0] sm:$0xff]   ;;  %v481_v11 = vld [vmem:[%s645_s1 + $0xa8] sm:$0xff]  }
   0x5   :  { %449 = vmatpush3.bf16.msra.mxu1 %v473_v3  ;;  %428 = vmatprep.subr.bf16.mxu0 %v474_v4  ;;  %v482_v12 = vld [vmem:[%s645_s1 + $0x60] sm:$0xff]   ;;  %v486_v16 = vld [vmem:[%s645_s1 + $0x58] sm:$0xff]   ;;  %v490_v20 = vld [vmem:[%s645_s1 + $0x50] sm:$0xff]  }
   0x6   :  { %450 = vmatprep.subr.bf16.mxu1 %v475_v5  ;;  %v483_v13 = vld [vmem:[%s645_s1 + $0xe0] sm:$0xff]   ;;  %v487_v17 = vld [vmem:[%s645_s1 + $0xd8] sm:$0xff]   ;;  %v491_v21 = vld [vmem:[%s645_s1 + $0xd0] sm:$0xff]  }
   0x7   :  { %v484_v14 = vld [vmem:[%s645_s1 + $0x20] sm:$0xff]   ;;  %v488_v18 = vld [vmem:[%s645_s1 + $0x18] sm:$0xff]   ;;  %v492_v22 = vld [vmem:[%s645_s1 + $0x10] sm:$0xff]  }
   0x8   :  { %429 = vmatpush3.bf16.msra.mxu0 %v476_v6  ;;  %v485_v15 = vld [vmem:[%s645_s1 + $0xa0] sm:$0xff]   ;;  %v489_v19 = vld [vmem:[%s645_s1 + $0x98] sm:$0xff]   ;;  %v493_v23 = vld [vmem:[%s645_s1 + $0x90] sm:$0xff]  }
   0x9   :  { %451 = vmatpush3.bf16.msra.mxu1 %v477_v7  ;;  %430 = vmatprep.subr.bf16.mxu0 %v478_v8  ;;  %v494_v24 = vld [vmem:[%s645_s1 + $0x48] sm:$0xff]   ;;  %v498_v28 = vld [vmem:[%s645_s1 + $0x40] sm:$0xff]  }
   0xa   :  { %452 = vmatprep.subr.bf16.mxu1 %v479_v9  ;;  %v495_v25 = vld [vmem:[%s645_s1 + $0xc8] sm:$0xff]   ;;  %v499_v29 = vld [vmem:[%s645_s1 + $0xc0] sm:$0xff]  }
   0xb   :  { %v496_v26 = vld [vmem:[%s645_s1 + $0x8] sm:$0xff]   ;;  %v500_v30 = vld [vmem:[%s645_s1] sm:$0xff]  }
   0xc   :  { %431 = vmatpush3.bf16.msra.mxu0 %v480_v10  ;;  %v497_v27 = vld [vmem:[%s645_s1 + $0x88] sm:$0xff]   ;;  %v501_v31 = vld [vmem:[%s645_s1 + $0x80] sm:$0xff]  }
   0xd   :  { %453 = vmatpush3.bf16.msra.mxu1 %v481_v11  ;;  %432 = vmatprep.subr.bf16.mxu0 %v482_v12  ;;  %v502_v32 = vld [vmem:[%s646_s0] ss:$16 sps:$4 sm:$0xff]   ;;  %v504_v33 = vld [vmem:[%s646_s0 + $0x4] ss:$16 sps:$4 sm:$0xff]   ;;  %v505_v34 = vld [vmem:[%s646_s0 + $0x8] ss:$16 sps:$4 sm:$0xff]  }
   0xe   :  { %454 = vmatprep.subr.bf16.mxu1 %v483_v13  ;;  %v507_v35 = vld [vmem:[%s646_s0 + $0xc] ss:$16 sps:$4 sm:$0xff]   ;;  %324 = vmatprep.mubr.bf16.mxu0 %v504_v33 }
   0xf   :  { %365 = vmatprep.mubr.bf16.mxu1 %v507_v35 }
  0x10   :  { %433 = vmatpush3.bf16.msra.mxu0 %v484_v14 }
  0x11   :  { %455 = vmatpush3.bf16.msra.mxu1 %v485_v15  ;;  %434 = vmatprep.subr.bf16.mxu0 %v486_v16 }
  0x12   :  { %456 = vmatprep.subr.bf16.mxu1 %v487_v17 }
  0x14   :  { %435 = vmatpush3.bf16.msra.mxu0 %v488_v18 }
  0x15   :  { %457 = vmatpush3.bf16.msra.mxu1 %v489_v19  ;;  %436 = vmatprep.subr.bf16.mxu0 %v490_v20 }
  0x16   :  { %458 = vmatprep.subr.bf16.mxu1 %v491_v21 }
  0x18   :  { %437 = vmatpush3.bf16.msra.mxu0 %v492_v22 }
  0x19   :  { %459 = vmatpush3.bf16.msra.mxu1 %v493_v23  ;;  %438 = vmatprep.subr.bf16.mxu0 %v494_v24 }
  0x1a   :  { %460 = vmatprep.subr.bf16.mxu1 %v495_v25 }
  0x1c   :  { %439 = vmatpush3.bf16.msra.mxu0 %v496_v26 }
  0x1d   :  { %461 = vmatpush3.bf16.msra.mxu1 %v497_v27  ;;  %440 = vmatprep.subr.bf16.mxu0 %v498_v28 }
  0x1e   :  { %462 = vmatprep.subr.bf16.mxu1 %v499_v29 }
  0x20   :  { %441 = vmatpush3.bf16.msra.mxu0 %v500_v30 }
  0x21   :  { %463 = vmatpush3.bf16.msra.mxu1 %v501_v31 }
  0x23   :  { %325 = vmatmul.mubr.bf16.vlgmr.msra.gmra.mxu0 %v502_v32 }
  0x24   :  { %366 = vmatmul.mubr.bf16.vlgmr.msra.gmra.mxu1 %v505_v34 }
  0xe3   :  { %v442_v36 = vpop.f32.mrf.mxu0 }
  0xe4   :  { %v464_v37 = vpop.f32.mrf.mxu1 }
  0xe5   :  { %v443_v38 = vpop.f32.mrf.mxu0 }
  0xe6   :  { %v444_v39 = vadd.f32 %v443_v38, %v442_v36  ;;  %v465_v40 = vpop.f32.mrf.mxu1 }
  0xe7   :  { %v466_v41 = vadd.f32 %v465_v40, %v464_v37  ;;  %v445_v42 = vpop.f32.mrf.mxu0 }
  0xe8   :  { %v467_v43 = vpop.f32.mrf.mxu1 }
  0xe9   :  { %v368_v44 = vadd.f32 %v466_v41, %v444_v39  ;;  %v446_v45 = vpop.f32.mrf.mxu0 }
  0xea   :  { %v447_v46 = vadd.f32 %v446_v45, %v445_v42  ;;  %v468_v47 = vpop.f32.mrf.mxu1 }
  0xeb   :  { %v374_v48 = vsub.f32 0.0, %v368_v44  ;;  %v469_v49 = vadd.f32 %v468_v47, %v467_v43 }
  0xed   :  { %v376_v50 = vmul.f32 1.442695, %v374_v48  ;;  %v371_v51 = vadd.f32 %v469_v49, %v447_v46 }
  0xef   :  { %508 = vpow2.f32 %v376_v50  ;;  %v375_v52 = vsub.f32 0.0, %v371_v51 }
  0xf1   :  { %v378_v53 = vmul.f32 1.442695, %v375_v52 }
  0xf3   :  { %510 = vpow2.f32 %v378_v53 }
  0xfc   :  { %v509_v54 = vpop.eup %508 }
  0xfd   :  { %v380_v55 = vadd.f32 1.0, %v509_v54 }
  0xff   :  { %512 = vrcp.f32 %v380_v55 }
 0x100   :  { %v511_v56 = vpop.eup %510 }
 0x101   :  { %v381_v57 = vadd.f32 1.0, %v511_v56 }
 0x103   :  { %514 = vrcp.f32 %v381_v57 }
 0x10c   :  { %v513_v58 = vpop.eup %512 }
 0x10d   :  { %384 = vst [vmem:[%s647_s2] sm:$0xff] %v513_v58 }
 0x110   :  { %v515_v59 = vpop.eup %514 }
 0x111   :  { %385 = vst [vmem:[%s647_s2 + $0x8] sm:$0xff] %v515_v59 }

</bundles_post_ra>
